<compile_context>
chip_gen: v5e
topology: v5e:2x2
jax: 0.10.0
libtpu: 0.0.40
codegen_flags: <defaults>
</compile_context>

<pallas_src>
import jax
import jax.numpy as jnp
from jax.experimental import pallas as pl
from jax.experimental.pallas import tpu as pltpu

_EPS = 1e-8          # torch.nn.CosineSimilarity default eps
_S_CAP = 1024        # max sublane rows per tile -> 131072 lanes/channel/step
_LANES = 128


def _cdiv(a, b):
    return -(-a // b)


def _make_kernel(S_blk, acc_rows, n_inner, HW):
    def _reduce(x):
        """(S_blk, 128) -> (acc_rows, 128) via a tree of aligned vreg adds."""
        if S_blk == acc_rows:
            return x
        slabs = [x[8 * i:8 * (i + 1)] for i in range(S_blk // 8)]
        while len(slabs) > 1:
            nxt = [slabs[i] + slabs[i + 1] for i in range(0, len(slabs) - 1, 2)]
            if len(slabs) % 2:
                nxt.append(slabs[-1])
            slabs = nxt
        return slabs[0]

    def kernel(out_ref, gt_ref, o_ref, acc_l1, acc_cs):
        o_idx = pl.program_id(1)
        t = pl.program_id(2)

        @pl.when(t == 0)
        def _():
            acc_l1[...] = jnp.zeros_like(acc_l1)
            acc_cs[...] = jnp.zeros_like(acc_cs)

        # Dense (S_blk, 128) channel slabs; upcast to f32 for the math.
        o0 = out_ref[0, 0].astype(jnp.float32)
        o1 = out_ref[0, 1].astype(jnp.float32)
        o2 = out_ref[0, 2].astype(jnp.float32)
        g0 = gt_ref[0, 0].astype(jnp.float32)
        g1 = gt_ref[0, 1].astype(jnp.float32)
        g2 = gt_ref[0, 2].astype(jnp.float32)

        # L1 per-element partial (channel reduce = 2 VPU adds, no XLU).
        l1_elem = jnp.abs(o0 - g0) + jnp.abs(o1 - g1) + jnp.abs(o2 - g2)

        # Cosine similarity over channels, torch semantics:
        #   cos = <x1, x2> / max(||x1|| * ||x2||, eps)
        # sqrt + divide fused into one EUP rsqrt + one VPU multiply.
        c0 = jnp.clip(o0, 0.0, 1.0)
        c1 = jnp.clip(o1, 0.0, 1.0)
        c2 = jnp.clip(o2, 0.0, 1.0)
        dot = c0 * g0 + c1 * g1 + c2 * g2
        nn1 = c0 * c0 + c1 * c1 + c2 * c2
        nn2 = g0 * g0 + g1 * g1 + g2 * g2
        cos = dot * jax.lax.rsqrt(jnp.maximum(nn1 * nn2, _EPS * _EPS))
        cs_elem = 1.0 - cos

        is_last = jnp.logical_and(o_idx == pl.num_programs(1) - 1,
                                  t == pl.num_programs(2) - 1)

        @pl.when(jnp.logical_not(is_last))
        def _():
            acc_l1[...] += _reduce(l1_elem)
            acc_cs[...] += _reduce(cs_elem)

        @pl.when(is_last)
        def _():
            # Mask the ragged tail (pad lanes and/or overhanging sublane rows)
            # so it contributes exactly zero to BOTH terms.
            base = (o_idx * n_inner + t) * S_blk
            row = jax.lax.broadcasted_iota(jnp.int32, (S_blk, _LANES), 0)
            lane = jax.lax.broadcasted_iota(jnp.int32, (S_blk, _LANES), 1)
            valid = (base + row) * _LANES + lane < HW
            acc_l1[...] += _reduce(jnp.where(valid, l1_elem, 0.0))
            acc_cs[...] += _reduce(jnp.where(valid, cs_elem, 0.0))

        # Finalize once per (batch, outer) group: dump dense partials.
        @pl.when(t == pl.num_programs(2) - 1)
        def _():
            o_ref[0, 0] = acc_l1[...]
            o_ref[0, 1] = acc_cs[...]

    return kernel


@jax.jit
def loss_kernel_depth_deblur(out, gt):
    """JAX/Pallas equivalent of LossKernelDepthDeblur.forward (3-channel gt)."""
    B, C, H, W = out.shape
    assert gt.shape == (B, C, H, W)
    assert C == 3, "only the 3-channel (else) branch is defined in the reference"

    HW = H * W
    S_total = _cdiv(HW, _LANES)
    HW128 = S_total * _LANES

    out_r = out.reshape(B, C, HW)
    gt_r = gt.reshape(B, C, HW)
    if HW128 != HW:
        # Only when H*W is not a multiple of 128 (rare for real image sizes):
        # pad so the spatial axis can be viewed lane-dense as (..., S, 128).
        # The padded elements are masked out in-kernel.
        out_r = jnp.pad(out_r, ((0, 0), (0, 0), (0, HW128 - HW)))
        gt_r = jnp.pad(gt_r, ((0, 0), (0, 0), (0, HW128 - HW)))

    out4 = out_r.reshape(B, C, S_total, _LANES)
    gt4 = gt_r.reshape(B, C, S_total, _LANES)

    # Tile selection: S_blk rows of 128 lanes, multiple of 8 (or the full,
    # tiny extent).  Ragged last tile handled by the in-kernel mask.
    if S_total >= 8:
        S_blk = min(_S_CAP, (S_total // 8) * 8)
        acc_rows = 8
    else:
        S_blk = S_total
        acc_rows = S_total
    n_sp = _cdiv(S_total, S_blk)

    # Second parallel grid axis so both v7x TensorCores have work when B == 1.
    if B == 1 and n_sp >= 2 and n_sp % 2 == 0:
        n_outer, n_inner = 2, n_sp // 2
    else:
        n_outer, n_inner = 1, n_sp

    grid = (B, n_outer, n_inner)
    itemsize = jnp.dtype(out.dtype).itemsize

    partials = pl.pallas_call(
        _make_kernel(S_blk, acc_rows, n_inner, HW),
        out_shape=jax.ShapeDtypeStruct((B * n_outer, 2, acc_rows, _LANES),
                                       jnp.float32),
        grid_spec=pltpu.PrefetchScalarGridSpec(
            num_scalar_prefetch=0,
            grid=grid,
            in_specs=[
                pl.BlockSpec((1, C, S_blk, _LANES),
                             lambda b, o, t: (b, 0, o * n_inner + t, 0)),
                pl.BlockSpec((1, C, S_blk, _LANES),
                             lambda b, o, t: (b, 0, o * n_inner + t, 0)),
            ],
            out_specs=pl.BlockSpec((1, 2, acc_rows, _LANES),
                                   lambda b, o, t: (b * n_outer + o, 0, 0, 0)),
            scratch_shapes=[
                pltpu.VMEM((acc_rows, _LANES), jnp.float32),
                pltpu.VMEM((acc_rows, _LANES), jnp.float32),
            ],
        ),
        compiler_params=pltpu.CompilerParams(
            dimension_semantics=("parallel", "parallel", "arbitrary"),
            vmem_limit_bytes=32 * 1024 * 1024,
        ),
        cost_estimate=pl.CostEstimate(
            flops=30 * B * S_total * _LANES,
            transcendentals=B * S_total * _LANES,
            bytes_accessed=(2 * B * C * S_total * _LANES * itemsize
                            + B * n_outer * 2 * acc_rows * _LANES * 4),
        ),
    )(out4, gt4)

    l1_mean = jnp.sum(partials[:, 0]) / jnp.float32(B * C * HW)
    cs_mean = jnp.sum(partials[:, 1]) / jnp.float32(B * HW)
    return l1_mean + cs_mean


def _reference(out, gt):
    """Pure-JAX reference matching the PyTorch forward (3-channel branch)."""
    out = out.astype(jnp.float32)
    gt = gt.astype(jnp.float32)
    l1 = jnp.mean(jnp.abs(out - gt))
    oc = jnp.clip(out, 0.0, 1.0)
    dot = jnp.sum(oc * gt, axis=1)
    nrm = jnp.sqrt(jnp.sum(oc * oc, axis=1) * jnp.sum(gt * gt, axis=1))
    cos = dot / jnp.maximum(nrm, _EPS)
    return l1 + jnp.mean(1.0 - cos)


if __name__ == "__main__":
    key = jax.random.PRNGKey(0)
    ok = True

    cases = [
        ((2, 3, 16, 16), jnp.float32),    # HW multiple of 128, single tiny tile
        ((2, 3, 17, 15), jnp.float32),    # HW=255 -> pad + lane-tail mask
        ((2, 3, 40, 48), jnp.float32),    # multi-tile accumulation + ragged rows
        ((1, 3, 96, 112), jnp.float32),   # B=1 -> n_outer=2 split + ragged tile
        ((2, 3, 16, 16), jnp.bfloat16),   # bf16 passthrough path
    ]
    for shape, dtype in cases:
        B, C, H, W = shape
        key, k1, k2 = jax.random.split(key, 3)
        out = jax.random.uniform(k1, shape, dtype=jnp.float32,
                                 minval=-0.2, maxval=1.2).astype(dtype)
        gt = jax.random.uniform(k2, shape, dtype=jnp.float32,
                                minval=0.0, maxval=1.0).astype(dtype)

        loss = jax.block_until_ready(loss_kernel_depth_deblur(out, gt))
        ref = _reference(out, gt)
        tol = 3e-5
        if not jnp.allclose(loss, ref, rtol=tol, atol=tol):
            ok = False
            print("MISMATCH", shape, dtype, float(loss), float(ref))

    if ok:
        print("KERNEL_OK")
</pallas_src>

<mosaic_0001>
module attributes {stable_mosaic.version = 11 : i64} {
  func.func @kernel(%arg0: i32, %arg1: i32, %arg2: i32, %arg3: memref<1x3x2x128xf32, #tpu.memory_space<vmem>>, %arg4: memref<1x3x2x128xf32, #tpu.memory_space<vmem>>, %arg5: memref<1x2x2x128xf32, #tpu.memory_space<vmem>>, %arg6: memref<2x128xf32, #tpu.memory_space<vmem>>, %arg7: memref<2x128xf32, #tpu.memory_space<vmem>>) attributes {dimension_semantics = [#tpu.dimension_semantics<parallel>, #tpu.dimension_semantics<parallel>, #tpu.dimension_semantics<arbitrary>], iteration_bounds = array<i64: 2, 1, 1>, scalar_prefetch = 0 : i64, scratch_operands = 2 : i64, tpu.core_type = #tpu.core_type<tc>, window_params = [{transform_indices = @transform_0, window_bounds = array<i64: 1, 3, 2, 128>}, {transform_indices = @transform_1, window_bounds = array<i64: 1, 3, 2, 128>}, {transform_indices = @transform_2, window_bounds = array<i64: 1, 2, 2, 128>}]} {
    %c0_i32 = arith.constant 0 : i32
    %0 = arith.cmpi eq, %arg2, %c0_i32 : i32
    %1 = arith.extui %0 : i1 to i32
    %c0_i32_0 = arith.constant 0 : i32
    %2 = arith.cmpi ne, %1, %c0_i32_0 : i32
    scf.if %2 {
      %cst_35 = arith.constant 0.000000e+00 : f32
      %68 = vector.broadcast %cst_35 : f32 to vector<2x128xf32>
      %c0_36 = arith.constant 0 : index
      %c0_37 = arith.constant 0 : index
      %69 = vector.load %arg6[%c0_36, %c0_37] : memref<2x128xf32, #tpu.memory_space<vmem>>, vector<2x128xf32>
      tpu.vector_store %arg6[%c0_36, %c0_37], %68 {strides = array<i32>} : memref<2x128xf32, #tpu.memory_space<vmem>>, vector<2x128xf32>,
      %cst_38 = arith.constant 0.000000e+00 : f32
      %70 = vector.broadcast %cst_38 : f32 to vector<2x128xf32>
      %c0_39 = arith.constant 0 : index
      %c0_40 = arith.constant 0 : index
      %71 = vector.load %arg7[%c0_39, %c0_40] : memref<2x128xf32, #tpu.memory_space<vmem>>, vector<2x128xf32>
      tpu.vector_store %arg7[%c0_39, %c0_40], %70 {strides = array<i32>} : memref<2x128xf32, #tpu.memory_space<vmem>>, vector<2x128xf32>,
    } else {
    }
    %c0 = arith.constant 0 : index
    %c0_1 = arith.constant 0 : index
    %c0_2 = arith.constant 0 : index
    %c0_3 = arith.constant 0 : index
    %3 = vector.load %arg3[%c0, %c0_1, %c0_2, %c0_3] : memref<1x3x2x128xf32, #tpu.memory_space<vmem>>, vector<1x1x2x128xf32>
    %4 = vector.shape_cast %3 : vector<1x1x2x128xf32> to vector<2x128xf32>
    %c0_4 = arith.constant 0 : index
    %c1 = arith.constant 1 : index
    %c0_5 = arith.constant 0 : index
    %c0_6 = arith.constant 0 : index
    %5 = vector.load %arg3[%c0_4, %c1, %c0_5, %c0_6] : memref<1x3x2x128xf32, #tpu.memory_space<vmem>>, vector<1x1x2x128xf32>
    %6 = vector.shape_cast %5 : vector<1x1x2x128xf32> to vector<2x128xf32>
    %c0_7 = arith.constant 0 : index
    %c2 = arith.constant 2 : index
    %c0_8 = arith.constant 0 : index
    %c0_9 = arith.constant 0 : index
    %7 = vector.load %arg3[%c0_7, %c2, %c0_8, %c0_9] : memref<1x3x2x128xf32, #tpu.memory_space<vmem>>, vector<1x1x2x128xf32>
    %8 = vector.shape_cast %7 : vector<1x1x2x128xf32> to vector<2x128xf32>
    %c0_10 = arith.constant 0 : index
    %c0_11 = arith.constant 0 : index
    %c0_12 = arith.constant 0 : index
    %c0_13 = arith.constant 0 : index
    %9 = vector.load %arg4[%c0_10, %c0_11, %c0_12, %c0_13] : memref<1x3x2x128xf32, #tpu.memory_space<vmem>>, vector<1x1x2x128xf32>
    %10 = vector.shape_cast %9 : vector<1x1x2x128xf32> to vector<2x128xf32>
    %c0_14 = arith.constant 0 : index
    %c1_15 = arith.constant 1 : index
    %c0_16 = arith.constant 0 : index
    %c0_17 = arith.constant 0 : index
    %11 = vector.load %arg4[%c0_14, %c1_15, %c0_16, %c0_17] : memref<1x3x2x128xf32, #tpu.memory_space<vmem>>, vector<1x1x2x128xf32>
    %12 = vector.shape_cast %11 : vector<1x1x2x128xf32> to vector<2x128xf32>
    %c0_18 = arith.constant 0 : index
    %c2_19 = arith.constant 2 : index
    %c0_20 = arith.constant 0 : index
    %c0_21 = arith.constant 0 : index
    %13 = vector.load %arg4[%c0_18, %c2_19, %c0_20, %c0_21] : memref<1x3x2x128xf32, #tpu.memory_space<vmem>>, vector<1x1x2x128xf32>
    %14 = vector.shape_cast %13 : vector<1x1x2x128xf32> to vector<2x128xf32>
    %15 = arith.subf %4, %10 : vector<2x128xf32>
    %16 = math.absf %15 : vector<2x128xf32>
    %17 = arith.subf %6, %12 : vector<2x128xf32>
    %18 = math.absf %17 : vector<2x128xf32>
    %19 = arith.addf %16, %18 : vector<2x128xf32>
    %20 = arith.subf %8, %14 : vector<2x128xf32>
    %21 = math.absf %20 : vector<2x128xf32>
    %22 = arith.addf %19, %21 : vector<2x128xf32>
    %cst = arith.constant 0.000000e+00 : f32
    %cst_22 = arith.constant 1.000000e+00 : f32
    %23 = vector.broadcast %cst : f32 to vector<2x128xf32>
    %24 = arith.maximumf %23, %4 : vector<2x128xf32>
    %25 = vector.broadcast %cst_22 : f32 to vector<2x128xf32>
    %26 = arith.minimumf %25, %24 : vector<2x128xf32>
    %cst_23 = arith.constant 0.000000e+00 : f32
    %cst_24 = arith.constant 1.000000e+00 : f32
    %27 = vector.broadcast %cst_23 : f32 to vector<2x128xf32>
    %28 = arith.maximumf %27, %6 : vector<2x128xf32>
    %29 = vector.broadcast %cst_24 : f32 to vector<2x128xf32>
    %30 = arith.minimumf %29, %28 : vector<2x128xf32>
    %cst_25 = arith.constant 0.000000e+00 : f32
    %cst_26 = arith.constant 1.000000e+00 : f32
    %31 = vector.broadcast %cst_25 : f32 to vector<2x128xf32>
    %32 = arith.maximumf %31, %8 : vector<2x128xf32>
    %33 = vector.broadcast %cst_26 : f32 to vector<2x128xf32>
    %34 = arith.minimumf %33, %32 : vector<2x128xf32>
    %35 = arith.mulf %26, %10 : vector<2x128xf32>
    %36 = arith.mulf %30, %12 : vector<2x128xf32>
    %37 = arith.addf %35, %36 : vector<2x128xf32>
    %38 = arith.mulf %34, %14 : vector<2x128xf32>
    %39 = arith.addf %37, %38 : vector<2x128xf32>
    %40 = arith.mulf %26, %26 : vector<2x128xf32>
    %41 = arith.mulf %30, %30 : vector<2x128xf32>
    %42 = arith.addf %40, %41 : vector<2x128xf32>
    %43 = arith.mulf %34, %34 : vector<2x128xf32>
    %44 = arith.addf %42, %43 : vector<2x128xf32>
    %45 = arith.mulf %10, %10 : vector<2x128xf32>
    %46 = arith.mulf %12, %12 : vector<2x128xf32>
    %47 = arith.addf %45, %46 : vector<2x128xf32>
    %48 = arith.mulf %14, %14 : vector<2x128xf32>
    %49 = arith.addf %47, %48 : vector<2x128xf32>
    %50 = arith.mulf %44, %49 : vector<2x128xf32>
    %cst_27 = arith.constant 1.000000e-16 : f32
    %51 = vector.broadcast %cst_27 : f32 to vector<2x128xf32>
    %52 = arith.maximumf %50, %51 : vector<2x128xf32>
    %53 = math.rsqrt %52 : vector<2x128xf32>
    %54 = arith.mulf %39, %53 : vector<2x128xf32>
    %cst_28 = arith.constant 1.000000e+00 : f32
    %55 = vector.broadcast %cst_28 : f32 to vector<2x128xf32>
    %56 = arith.subf %55, %54 : vector<2x128xf32>
    %c0_i32_29 = arith.constant 0 : i32
    %57 = arith.cmpi eq, %arg1, %c0_i32_29 : i32
    %c0_i32_30 = arith.constant 0 : i32
    %58 = arith.cmpi eq, %arg2, %c0_i32_30 : i32
    %59 = arith.andi %57, %58 : i1
    %true = arith.constant true
    %60 = arith.xori %59, %true : i1
    %61 = arith.extui %60 : i1 to i32
    %c0_i32_31 = arith.constant 0 : i32
    %62 = arith.cmpi ne, %61, %c0_i32_31 : i32
    scf.if %62 {
      %c0_35 = arith.constant 0 : index
      %c0_36 = arith.constant 0 : index
      %68 = vector.load %arg6[%c0_35, %c0_36] : memref<2x128xf32, #tpu.memory_space<vmem>>, vector<2x128xf32>
      %69 = arith.addf %68, %22 : vector<2x128xf32>
      %c0_37 = arith.constant 0 : index
      %c0_38 = arith.constant 0 : index
      %70 = vector.load %arg6[%c0_37, %c0_38] : memref<2x128xf32, #tpu.memory_space<vmem>>, vector<2x128xf32>
      tpu.vector_store %arg6[%c0_37, %c0_38], %69 {strides = array<i32>} : memref<2x128xf32, #tpu.memory_space<vmem>>, vector<2x128xf32>,
      %c0_39 = arith.constant 0 : index
      %c0_40 = arith.constant 0 : index
      %71 = vector.load %arg7[%c0_39, %c0_40] : memref<2x128xf32, #tpu.memory_space<vmem>>, vector<2x128xf32>
      %72 = arith.addf %71, %56 : vector<2x128xf32>
      %c0_41 = arith.constant 0 : index
      %c0_42 = arith.constant 0 : index
      %73 = vector.load %arg7[%c0_41, %c0_42] : memref<2x128xf32, #tpu.memory_space<vmem>>, vector<2x128xf32>
      tpu.vector_store %arg7[%c0_41, %c0_42], %72 {strides = array<i32>} : memref<2x128xf32, #tpu.memory_space<vmem>>, vector<2x128xf32>,
    } else {
    }
    %63 = arith.extui %59 : i1 to i32
    %c0_i32_32 = arith.constant 0 : i32
    %64 = arith.cmpi ne, %63, %c0_i32_32 : i32
    scf.if %64 {
      %c1_i32 = arith.constant 1 : i32
      %68 = arith.muli %arg1, %c1_i32 : i32
      %69 = arith.addi %68, %arg2 : i32
      %c2_i32 = arith.constant 2 : i32
      %70 = arith.muli %69, %c2_i32 : i32
      %71 = tpu.iota {dimensions = array<i32: 0>} : vector<2x128xi32>
      %72 = tpu.iota {dimensions = array<i32: 1>} : vector<2x128xi32>
      %73 = vector.broadcast %70 : i32 to vector<2x128xi32>
      %74 = arith.addi %73, %71 : vector<2x128xi32>
      %c128_i32 = arith.constant 128 : i32
      %75 = vector.broadcast %c128_i32 : i32 to vector<2x128xi32>
      %76 = arith.muli %74, %75 : vector<2x128xi32>
      %77 = arith.addi %76, %72 : vector<2x128xi32>
      %c256_i32 = arith.constant 256 : i32
      %78 = vector.broadcast %c256_i32 : i32 to vector<2x128xi32>
      %79 = arith.cmpi slt, %77, %78 : vector<2x128xi32>
      %c0_35 = arith.constant 0 : index
      %c0_36 = arith.constant 0 : index
      %80 = vector.load %arg6[%c0_35, %c0_36] : memref<2x128xf32, #tpu.memory_space<vmem>>, vector<2x128xf32>
      %cst_37 = arith.constant 0.000000e+00 : f32
      %81 = vector.broadcast %cst_37 : f32 to vector<2x128xf32>
      %82 = arith.select %79, %22, %81 : vector<2x128xi1>, vector<2x128xf32>
      %83 = arith.addf %80, %82 : vector<2x128xf32>
      %c0_38 = arith.constant 0 : index
      %c0_39 = arith.constant 0 : index
      %84 = vector.load %arg6[%c0_38, %c0_39] : memref<2x128xf32, #tpu.memory_space<vmem>>, vector<2x128xf32>
      tpu.vector_store %arg6[%c0_38, %c0_39], %83 {strides = array<i32>} : memref<2x128xf32, #tpu.memory_space<vmem>>, vector<2x128xf32>,
      %c0_40 = arith.constant 0 : index
      %c0_41 = arith.constant 0 : index
      %85 = vector.load %arg7[%c0_40, %c0_41] : memref<2x128xf32, #tpu.memory_space<vmem>>, vector<2x128xf32>
      %cst_42 = arith.constant 0.000000e+00 : f32
      %86 = vector.broadcast %cst_42 : f32 to vector<2x128xf32>
      %87 = arith.select %79, %56, %86 : vector<2x128xi1>, vector<2x128xf32>
      %88 = arith.addf %85, %87 : vector<2x128xf32>
      %c0_43 = arith.constant 0 : index
      %c0_44 = arith.constant 0 : index
      %89 = vector.load %arg7[%c0_43, %c0_44] : memref<2x128xf32, #tpu.memory_space<vmem>>, vector<2x128xf32>
      tpu.vector_store %arg7[%c0_43, %c0_44], %88 {strides = array<i32>} : memref<2x128xf32, #tpu.memory_space<vmem>>, vector<2x128xf32>,
    } else {
    }
    %c0_i32_33 = arith.constant 0 : i32
    %65 = arith.cmpi eq, %arg2, %c0_i32_33 : i32
    %66 = arith.extui %65 : i1 to i32
    %c0_i32_34 = arith.constant 0 : i32
    %67 = arith.cmpi ne, %66, %c0_i32_34 : i32
    scf.if %67 {
      %c0_35 = arith.constant 0 : index
      %c0_36 = arith.constant 0 : index
      %68 = vector.load %arg6[%c0_35, %c0_36] : memref<2x128xf32, #tpu.memory_space<vmem>>, vector<2x128xf32>
      %c0_37 = arith.constant 0 : index
      %c0_38 = arith.constant 0 : index
      %c0_39 = arith.constant 0 : index
      %c0_40 = arith.constant 0 : index
      %69 = vector.load %arg5[%c0_37, %c0_38, %c0_39, %c0_40] : memref<1x2x2x128xf32, #tpu.memory_space<vmem>>, vector<1x1x2x128xf32>
      %70 = vector.shape_cast %69 : vector<1x1x2x128xf32> to vector<2x128xf32>
      %71 = vector.shape_cast %68 : vector<2x128xf32> to vector<1x1x2x128xf32>
      tpu.vector_store %arg5[%c0_37, %c0_38, %c0_39, %c0_40], %71 {strides = array<i32>} : memref<1x2x2x128xf32, #tpu.memory_space<vmem>>, vector<1x1x2x128xf32>,
      %c0_41 = arith.constant 0 : index
      %c0_42 = arith.constant 0 : index
      %72 = vector.load %arg7[%c0_41, %c0_42] : memref<2x128xf32, #tpu.memory_space<vmem>>, vector<2x128xf32>
      %c0_43 = arith.constant 0 : index
      %c1_44 = arith.constant 1 : index
      %c0_45 = arith.constant 0 : index
      %c0_46 = arith.constant 0 : index
      %73 = vector.load %arg5[%c0_43, %c1_44, %c0_45, %c0_46] : memref<1x2x2x128xf32, #tpu.memory_space<vmem>>, vector<1x1x2x128xf32>
      %74 = vector.shape_cast %73 : vector<1x1x2x128xf32> to vector<2x128xf32>
      %75 = vector.shape_cast %72 : vector<2x128xf32> to vector<1x1x2x128xf32>
      tpu.vector_store %arg5[%c0_43, %c1_44, %c0_45, %c0_46], %75 {strides = array<i32>} : memref<1x2x2x128xf32, #tpu.memory_space<vmem>>, vector<1x1x2x128xf32>,
    } else {
    }
    return
  }
  func.func @transform_0(%arg0: i32, %arg1: i32, %arg2: i32) -> (i32, i32, i32, i32) {
    %c1_i32 = arith.constant 1 : i32
    %0 = arith.muli %arg1, %c1_i32 : i32
    %1 = arith.addi %0, %arg2 : i32
    %c0_i32 = arith.constant 0 : i32
    %c0_i32_0 = arith.constant 0 : i32
    %c0_i32_1 = arith.constant 0 : i32
    return %arg0, %c0_i32, %1, %c0_i32_0 : i32, i32, i32, i32
  }
  func.func @transform_1(%arg0: i32, %arg1: i32, %arg2: i32) -> (i32, i32, i32, i32) {
    %c1_i32 = arith.constant 1 : i32
    %0 = arith.muli %arg1, %c1_i32 : i32
    %1 = arith.addi %0, %arg2 : i32
    %c0_i32 = arith.constant 0 : i32
    %c0_i32_0 = arith.constant 0 : i32
    %c0_i32_1 = arith.constant 0 : i32
    return %arg0, %c0_i32, %1, %c0_i32_0 : i32, i32, i32, i32
  }
  func.func @transform_2(%arg0: i32, %arg1: i32, %arg2: i32) -> (i32, i32, i32, i32) {
    %c1_i32 = arith.constant 1 : i32
    %0 = arith.muli %arg0, %c1_i32 : i32
    %1 = arith.addi %0, %arg1 : i32
    %c0_i32 = arith.constant 0 : i32
    %c0_i32_0 = arith.constant 0 : i32
    %c0_i32_1 = arith.constant 0 : i32
    %c0_i32_2 = arith.constant 0 : i32
    return %1, %c0_i32, %c0_i32_0, %c0_i32_1 : i32, i32, i32, i32
  }
}

</mosaic_0001>

<bundles_post_ra>
// kernel: loss_kernel_depth_deblur.1
= control target key start
LH: loop header
LB: loop body
LE: loop exit
PB: predicated region body
PF: predicated region fallthrough
CT: control target
= control target key end

     0   :  { %s503_s9 = smov 0   ;;  %s505_s10 = smov 0   ;;  %s545_s0 = inlined_call_operand.vmem [shape: f32[2,3,2,128], index: 0, kind: input, shape index: {}]   ;;  %s546_s1 = inlined_call_operand.vmem [shape: f32[2,3,2,128], index: 1, kind: input, shape index: {}]   ;;  %s547_s2 = inlined_call_operand.vmem [shape: f32[2,2,2,128], index: 2, kind: output, shape index: {}]  }
   0x1   :  { %s507_s11 = smov 0  }
   0x2 LB: > { %s31_s12 = sadd.s32 1, %s481_s10  ;;  %p422_p0 = scmp.ge.s32.totalorder %s485_s11, 1  ;;  %s485_s11 = sphi %s507_s11, %s12_s11   ;;  %s481_s10 = sphi %s505_s10, %s549_s10   ;;  %s477_s9 = sphi %s503_s9, %s548_s9  }
   0x3   : > { %p33_p1 = scmp.ge.s32.totalorder %s31_s12, 2  ;;  %p161_p2 = scmp.lt.s32.totalorder %s485_s11, 3 }
   0x5   : > { %s551_s12 = smov (%p33_p1, %s31_s12), 0  ;;  %p162_p3 = pnand %p422_p0, %p161_p2 }
   0x6   : > { %p198_p4 = scmp.lt.s32.totalorder (!%p162_p3), %s477_s9, 1 }
   0x7   : > { %165 = sbr.rel (%p162_p3) target bundleno = 67 (0x43), region = 28 }
   0xc   : > { %v290_v0 = vlaneseq  ;;  %v487_v1 = vmov 0.0   ;;  %s553_s9 = smov (!%p198_p4, %s477_s9), 1 }
   0xd   : > { %228 = vst [vmem:[#allocation2] sm:$0x3] %v487_v1  ;;  %s435_s13 = smul.u32 6, %s553_s9  ;;  %s434_s20 = sshll.u32 %s553_s9, 2 }
   0xe   : > { %229 = vst [vmem:[#allocation3] sm:$0x3] %v487_v1  ;;  %v291_v2 = vshrl.u32 %v290_v0, 7  ;;  %v293_v3 = vand.u32 127, %v290_v0  ;;  %s222_s23 = scalar_lea.vmem %s547_s2, %s434_s20 }
   0xf   : > { %s205_s16 = scalar_lea.vmem %s545_s0, %s435_s13  ;;  %s215_s19 = scalar_lea.vmem %s546_s1, %s435_s13 }
  0x10   : > { %v296_v4 = vmul.u32 128, %v291_v2  ;;  %v230_v5 = vld [vmem:[%s205_s16] sm:$0x3]  ;;  %v427_v6 = vld [vmem:[%s205_s16 + $0x2] sm:$0x3] }
  0x11   : > { %v428_v7 = vld [vmem:[%s205_s16 + $0x4] sm:$0x3]  ;;  %v235_v8 = vld [vmem:[%s215_s19] sm:$0x3]  ;;  %v429_v9 = vld [vmem:[%s215_s19 + $0x2] sm:$0x3] }
  0x12   : > { %v430_v10 = vld [vmem:[%s215_s19 + $0x4] sm:$0x3]  ;;  %v297_v11 = vadd.s32 %v296_v4, %v293_v3  ;;  %v240_v12 = vsub.f32 %v230_v5, %v235_v8  ;;  %v242_v13 = vsub.f32 %v427_v6, %v429_v9  ;;  %v248_v15 = vmax.f32 %v230_v5, 0.0 }
  0x13   : > { %v245_v14 = vsub.f32 %v428_v7, %v430_v10  ;;  %v250_v16 = vmax.f32 %v427_v6, 0.0  ;;  %v252_v17 = vmax.f32 %v428_v7, 0.0  ;;  %v264_v18 = vmul.f32 %v235_v8, %v235_v8 }
  0x14   : > { %v265_v19 = vmul.f32 %v429_v9, %v429_v9  ;;  %v241_v20 = vand.u32 2147483647, %v240_v12  ;;  %v243_v21 = vand.u32 2147483647, %v242_v13  ;;  %v267_v23 = vmul.f32 %v430_v10, %v430_v10  ;;  %v299_v33 = vld [vmem:[#allocation2] sm:$0x3] }
  0x15   : > { %v246_v22 = vand.u32 2147483647, %v245_v14  ;;  %v249_v24 = vmin.f32 %v248_v15, 1.0  ;;  %v251_v25 = vmin.f32 %v250_v16, 1.0  ;;  %v253_v26 = vmin.f32 %v252_v17, 1.0 }
  0x16   : > { %v266_v27 = vadd.f32 %v265_v19, %v264_v18  ;;  %v244_v28 = vadd.f32 %v243_v21, %v241_v20  ;;  %vm298_vm0 = vcmp.lt.s32.totalorder %v297_v11, 256  ;;  %v303_v56 = vld [vmem:[#allocation3] sm:$0x3] }
  0x17   : > { %v259_v29 = vmul.f32 %v249_v24, %v249_v24  ;;  %v260_v30 = vmul.f32 %v251_v25, %v251_v25  ;;  %v262_v31 = vmul.f32 %v253_v26, %v253_v26  ;;  %v254_v43 = vmul.f32 %v249_v24, %v235_v8 }
  0x18   : > { %v247_v32 = vadd.f32 %v246_v22, %v244_v28  ;;  %v268_v35 = vadd.f32 %v267_v23, %v266_v27  ;;  %v255_v44 = vmul.f32 %v429_v9, %v251_v25  ;;  %v257_v48 = vmul.f32 %v430_v10, %v253_v26 }
  0x19   : > { %v261_v34 = vadd.f32 %v260_v30, %v259_v29 }
  0x1a   : > { %v300_v36 = vsel %vm298_vm0, %v247_v32, 0.0  ;;  %v256_v47 = vadd.f32 %v255_v44, %v254_v43 }
  0x1b   : > { %v263_v37 = vadd.f32 %v262_v31, %v261_v34  ;;  %v301_v38 = vadd.f32 %v300_v36, %v299_v33 }
  0x1c   : > { %v258_v51 = vadd.f32 %v257_v48, %v256_v47 }
  0x1d   : > { %302 = vst [vmem:[#allocation2] sm:$0x3] %v301_v38  ;;  %v269_v39 = vmul.f32 %v268_v35, %v263_v37 }
  0x1f   : > { %v270_v40 = vmax.f32 %v269_v39, 1e-16 }
  0x21   : > { %461 = vrsqrt.f32 %v270_v40  ;;  %vm277_vm1 = vweird.f32 %v270_v40 }
  0x24   : > { %v319_v41 = vld [vmem:[#allocation2] sm:$0x3] }
  0x25   : > { %320 = vst [vmem:[%s222_s23] sm:$0x3] %v319_v41 }
  0x27   : > { %v462_v42 = vpop.eup %461 }
  0x28   : > { %v272_v45 = vmul.f32 %v462_v42, %v270_v40  ;;  %vm278_vm2 = vweird.f32 %v462_v42 }
  0x29   : > { %vm279_vm3 = vmor %vm277_vm1, %vm278_vm2 }
  0x2a   : > { %v273_v46 = vmul.f32 %v462_v42, %v272_v45 }
  0x2c   : > { %v274_v49 = vmul.f32 0.5, %v273_v46 }
  0x2e   : > { %v275_v50 = vsub.f32 1.5, %v274_v49 }
  0x30   : > { %v276_v52 = vmul.f32 %v462_v42, %v275_v50 }
  0x32   : > { %v280_v53 = vsel %vm279_vm3, %v462_v42, %v276_v52 }
  0x33   : > { %v281_v54 = vmul.f32 %v280_v53, %v258_v51 }
  0x35   : > { %v282_v55 = vsub.f32 1.0, %v281_v54 }
  0x37   : > { %v304_v57 = vsel %vm298_vm0, %v282_v55, 0.0 }
  0x38   : > { %v305_v58 = vadd.f32 %v304_v57, %v303_v56 }
  0x3a   : > { %306 = vst [vmem:[#allocation3] sm:$0x3] %v305_v58 }
  0x41   : > { %v321_v59 = vld [vmem:[#allocation3] sm:$0x3] }
  0x42   : > { %431 = vst [vmem:[%s222_s23 + $0x2] sm:$0x3] %v321_v59 }
  0x43 PF: > { %s12_s11 = sadd.s32 1, %s485_s11   ;;  %s548_s9 = smov %s481_s10 }
  0x44   : > { %p9_p5 = scmp.ge.s32.totalorder %s12_s11, 4   ;;  %s549_s10 = smov %s551_s12 }
  0x46   :  { %11 = sbr.rel (!%p9_p5) target bundleno = 2 (0x2), region = 82 }

</bundles_post_ra>
